<compile_context>
chip_gen: v7x
topology: tpu7x:2x2x1
jax: 0.10.0
libtpu: 0.0.40
codegen_flags: <defaults>
</compile_context>

<pallas_src>
import jax
import jax.numpy as jnp
from jax.experimental import pallas as pl
from jax.experimental.pallas import tpu as pltpu


# ---------------------------------------------------------------------------
# helpers
# ---------------------------------------------------------------------------
def _round_up(x, m):
    return ((x + m - 1) // m) * m


def _vmem_ceiling():
    """75% of physical VMEM for this generation (headroom for compiler scratch)."""
    try:
        cap = int(pltpu.get_tpu_info().vmem_capacity_bytes)
    except Exception:
        cap = 64 << 20  # conservative fallback (v7x)
    return (cap * 3) // 4


def _vmem_limit(est_bytes):
    ceiling = _vmem_ceiling()
    return int(min(ceiling, max(32 << 20, (3 * est_bytes) // 2)))


def _tiles_for(s_pad):
    """Row tile / reduction tile for the large-S path (s_pad % 128 == 0)."""
    tm = 256 if (s_pad % 256 == 0 and s_pad >= 512) else 128
    tk = 128
    for cand in (512, 384, 256):
        if s_pad % cand == 0:
            tk = cand
            break
    return tm, tk


# ---------------------------------------------------------------------------
# kernels
# ---------------------------------------------------------------------------
def _fused_small_kernel(x_ref, adj_ref, w1_ref, b1_ref, w2_ref, b2_ref,
                        wp_ref, bp_ref, emb_ref, out_ref):
    # Whole forward pass in one VMEM-resident kernel (small stock counts).
    fw1 = jnp.dot(x_ref[...], w1_ref[...],
                  preferred_element_type=jnp.float32).astype(jnp.bfloat16)
    h1 = jnp.maximum(
        jnp.dot(adj_ref[...], fw1, preferred_element_type=jnp.float32)
        + b1_ref[...], 0.0).astype(jnp.bfloat16)
    fw2 = jnp.dot(h1, w2_ref[...],
                  preferred_element_type=jnp.float32).astype(jnp.bfloat16)
    emb = jnp.dot(adj_ref[...], fw2,
                  preferred_element_type=jnp.float32) + b2_ref[...]
    emb_ref[...] = emb.astype(emb_ref.dtype)
    # N=1 head: elementwise multiply + lane reduction (VPU/XLU), no 1-col MXU.
    out_col = jnp.sum(emb * wp_ref[...], axis=-1, keepdims=True) + bp_ref[0, 0]
    out_ref[...] = jnp.broadcast_to(out_col, out_ref.shape).astype(out_ref.dtype)


def _feat_matmul_kernel(feat_ref, w_ref, fw_ref):
    # fw = feat @ W ; bf16 operands, f32 accumulation, bf16 result.
    fw_ref[...] = jnp.dot(
        feat_ref[...], w_ref[...], preferred_element_type=jnp.float32
    ).astype(fw_ref.dtype)


def _make_layer1_kernel(fw_resident, tk):
    """fw2 = relu(A @ fw1 + b1) @ W2 ; K-accumulated in f32 VMEM scratch."""

    def kernel(adj_ref, fw1_ref, b1_ref, w2_ref, fw2_ref, acc_ref):
        k = pl.program_id(1)

        @pl.when(k == 0)
        def _():
            acc_ref[...] = jnp.zeros_like(acc_ref)

        if fw_resident:
            start = pl.multiple_of(k * tk, tk)
            fw_tile = fw1_ref[pl.ds(start, tk), :]
        else:
            fw_tile = fw1_ref[...]
        acc_ref[...] += jnp.dot(adj_ref[...], fw_tile,
                                preferred_element_type=jnp.float32)

        @pl.when(k == pl.num_programs(1) - 1)
        def _():
            h1 = jnp.maximum(acc_ref[...] + b1_ref[...], 0.0).astype(jnp.bfloat16)
            # Fused second feature matmul: h1 never round-trips through HBM.
            fw2_ref[...] = jnp.dot(
                h1, w2_ref[...], preferred_element_type=jnp.float32
            ).astype(fw2_ref.dtype)

    return kernel


def _make_layer2_kernel(fw_resident, tk):
    """emb = A @ fw2 + b2 ; out = emb @ wp + bp.

    Accumulates directly into the f32 emb output block (its block index is
    constant over k, so it is VMEM-resident) -- no separate scratch.
    """

    def kernel(adj_ref, fw2_ref, b2_ref, wp_ref, bp_ref, emb_ref, out_ref):
        k = pl.program_id(1)

        @pl.when(k == 0)
        def _():
            emb_ref[...] = jnp.zeros_like(emb_ref)

        if fw_resident:
            start = pl.multiple_of(k * tk, tk)
            fw_tile = fw2_ref[pl.ds(start, tk), :]
        else:
            fw_tile = fw2_ref[...]
        emb_ref[...] += jnp.dot(adj_ref[...], fw_tile,
                                preferred_element_type=jnp.float32)

        @pl.when(k == pl.num_programs(1) - 1)
        def _():
            emb = emb_ref[...] + b2_ref[...]
            emb_ref[...] = emb
            out_col = jnp.sum(emb * wp_ref[...], axis=-1, keepdims=True) + bp_ref[0, 0]
            out_ref[...] = jnp.broadcast_to(out_col, out_ref.shape).astype(out_ref.dtype)

    return kernel


# ---------------------------------------------------------------------------
# pallas_call wrappers
# ---------------------------------------------------------------------------
def _fused_small(x_p, adj_p, w1_p, b1_p, w2_p, b2_p, wp_row, bp):
    s_pad, in_pad = x_p.shape
    hid_pad = w1_p.shape[1]
    est = (2 * (s_pad * s_pad * 2 + s_pad * in_pad * 2 + in_pad * hid_pad * 2
                + hid_pad * hid_pad * 2 + s_pad * hid_pad * 4 + s_pad * 128 * 4)
           + 4 * s_pad * hid_pad * 4)   # intermediates fw1/h1/fw2/emb
    return pl.pallas_call(
        _fused_small_kernel,
        out_shape=(jax.ShapeDtypeStruct((s_pad, hid_pad), jnp.float32),  # emb
                   jax.ShapeDtypeStruct((s_pad, 128), jnp.float32)),     # out slab
        grid=(1,),
        in_specs=[
            pl.BlockSpec((s_pad, in_pad), lambda i: (0, 0)),       # x
            pl.BlockSpec((s_pad, s_pad), lambda i: (0, 0)),        # adj
            pl.BlockSpec((in_pad, hid_pad), lambda i: (0, 0)),     # w1
            pl.BlockSpec((1, hid_pad), lambda i: (0, 0)),          # b1
            pl.BlockSpec((hid_pad, hid_pad), lambda i: (0, 0)),    # w2
            pl.BlockSpec((1, hid_pad), lambda i: (0, 0)),          # b2
            pl.BlockSpec((1, hid_pad), lambda i: (0, 0)),          # wp row
            pl.BlockSpec(memory_space=pltpu.MemorySpace.SMEM),     # bp scalar
        ],
        out_specs=(pl.BlockSpec((s_pad, hid_pad), lambda i: (0, 0)),
                   pl.BlockSpec((s_pad, 128), lambda i: (0, 0))),
        compiler_params=pltpu.CompilerParams(
            dimension_semantics=("arbitrary",),
            vmem_limit_bytes=_vmem_limit(est)),
    )(x_p, adj_p, w1_p, b1_p, w2_p, b2_p, wp_row, bp)


def _feat_matmul(feat, w, *, tm):
    """fw = feat @ w, row-tiled. feat: [S_pad, K_pad] bf16, w: [K_pad, H_pad] bf16."""
    s_pad, k_pad = feat.shape
    hid_pad = w.shape[1]
    est = 2 * (tm * k_pad * 2 + k_pad * hid_pad * 2 + tm * hid_pad * 2)
    return pl.pallas_call(
        _feat_matmul_kernel,
        out_shape=jax.ShapeDtypeStruct((s_pad, hid_pad), jnp.bfloat16),
        grid=(s_pad // tm,),
        in_specs=[pl.BlockSpec((tm, k_pad), lambda i: (i, 0)),
                  pl.BlockSpec((k_pad, hid_pad), lambda i: (0, 0))],
        out_specs=pl.BlockSpec((tm, hid_pad), lambda i: (i, 0)),
        compiler_params=pltpu.CompilerParams(
            dimension_semantics=("parallel",),
            vmem_limit_bytes=_vmem_limit(est)),
    )(feat, w)


def _fw_spec_and_bytes(s_pad, hid_pad, tk):
    """Keep fw fully resident in VMEM across row tiles when the budget allows."""
    fw_bytes = s_pad * hid_pad * 2
    resident = 2 * fw_bytes <= _vmem_ceiling() // 3
    if resident:
        return True, pl.BlockSpec((s_pad, hid_pad), lambda i, k: (0, 0)), 2 * fw_bytes
    return False, pl.BlockSpec((tk, hid_pad), lambda i, k: (k, 0)), 2 * tk * hid_pad * 2


def _gcn_layer1_fused_w2(adj, fw1, b1, w2, *, tm, tk):
    s_pad = adj.shape[0]
    hid_pad = fw1.shape[1]
    grid = (s_pad // tm, s_pad // tk)
    resident, fw_spec, fw_vmem = _fw_spec_and_bytes(s_pad, hid_pad, tk)

    est = (2 * tm * tk * 2 + fw_vmem + 2 * 8 * hid_pad * 4
           + 2 * hid_pad * hid_pad * 2 + 2 * tm * hid_pad * 2
           + tm * hid_pad * 4)
    return pl.pallas_call(
        _make_layer1_kernel(resident, tk),
        out_shape=jax.ShapeDtypeStruct((s_pad, hid_pad), jnp.bfloat16),  # fw2
        grid=grid,
        in_specs=[
            pl.BlockSpec((tm, tk), lambda i, k: (i, k)),            # adj tile
            fw_spec,                                                # fw1
            pl.BlockSpec((1, hid_pad), lambda i, k: (0, 0)),        # b1
            pl.BlockSpec((hid_pad, hid_pad), lambda i, k: (0, 0)),  # w2
        ],
        out_specs=pl.BlockSpec((tm, hid_pad), lambda i, k: (i, 0)),
        scratch_shapes=[pltpu.VMEM((tm, hid_pad), jnp.float32)],
        compiler_params=pltpu.CompilerParams(
            dimension_semantics=("parallel", "arbitrary"),
            vmem_limit_bytes=_vmem_limit(est)),
    )(adj, fw1, b1, w2)


def _gcn_layer2_head(adj, fw2, b2, wp_row, bp, *, tm, tk):
    s_pad = adj.shape[0]
    hid_pad = fw2.shape[1]
    grid = (s_pad // tm, s_pad // tk)
    resident, fw_spec, fw_vmem = _fw_spec_and_bytes(s_pad, hid_pad, tk)

    est = (2 * tm * tk * 2 + fw_vmem + 2 * 2 * 8 * hid_pad * 4
           + 2 * tm * hid_pad * 4 + 2 * tm * 128 * 4)
    return pl.pallas_call(
        _make_layer2_kernel(resident, tk),
        out_shape=(jax.ShapeDtypeStruct((s_pad, hid_pad), jnp.float32),  # emb
                   jax.ShapeDtypeStruct((s_pad, 128), jnp.float32)),     # out slab
        grid=grid,
        in_specs=[
            pl.BlockSpec((tm, tk), lambda i, k: (i, k)),          # adj tile
            fw_spec,                                              # fw2
            pl.BlockSpec((1, hid_pad), lambda i, k: (0, 0)),      # b2
            pl.BlockSpec((1, hid_pad), lambda i, k: (0, 0)),      # wp row
            pl.BlockSpec(memory_space=pltpu.MemorySpace.SMEM),    # bp scalar
        ],
        out_specs=(pl.BlockSpec((tm, hid_pad), lambda i, k: (i, 0)),
                   pl.BlockSpec((tm, 128), lambda i, k: (i, 0))),
        compiler_params=pltpu.CompilerParams(
            dimension_semantics=("parallel", "arbitrary"),
            vmem_limit_bytes=_vmem_limit(est)),
    )(adj, fw2, b2, wp_row, bp)


# ---------------------------------------------------------------------------
# Student forward
# ---------------------------------------------------------------------------
@jax.jit
def student_forward(x, adj, params):
    """x: [stocks, in_size], adj: [stocks, stocks]
    -> (out [stocks, 1], sp_embedding [stocks, hid])."""
    stocks, in_size = x.shape
    hid = params["w1"].shape[1]
    in_pad = _round_up(in_size, 128)
    hid_pad = _round_up(hid, 128)

    def pad2(a, rows, cols, dtype):
        buf = jnp.zeros((rows, cols), dtype)
        return buf.at[: a.shape[0], : a.shape[1]].set(a.astype(dtype))

    w1_p = pad2(params["w1"], in_pad, hid_pad, jnp.bfloat16)
    w2_p = pad2(params["w2"], hid_pad, hid_pad, jnp.bfloat16)
    b1_p = pad2(params["b1"], 1, hid_pad, jnp.float32)
    b2_p = pad2(params["b2"], 1, hid_pad, jnp.float32)
    wp_row = pad2(params["wp"].T, 1, hid_pad, jnp.float32)
    bp = params["bp"].astype(jnp.float32).reshape(1, 1)

    # --- small-S: single fully fused kernel ---------------------------------
    use_small = stocks <= 256
    if use_small:
        s_pad = _round_up(stocks, 8)
        est_small = (2 * (s_pad * s_pad * 2 + s_pad * in_pad * 2
                          + in_pad * hid_pad * 2 + hid_pad * hid_pad * 2
                          + s_pad * hid_pad * 4 + s_pad * 128 * 4)
                     + 4 * s_pad * hid_pad * 4)
        use_small = est_small <= _vmem_ceiling() // 2

    if use_small:
        s_pad = _round_up(stocks, 8)
        adj_p = pad2(adj, s_pad, s_pad, jnp.bfloat16)
        x_p = pad2(x, s_pad, in_pad, jnp.bfloat16)
        emb_p, out_p = _fused_small(x_p, adj_p, w1_p, b1_p, w2_p, b2_p, wp_row, bp)
        return out_p[:stocks, :1], emb_p[:stocks, :hid]

    # --- large-S: tiled, HBM-streaming path ----------------------------------
    s_pad = _round_up(stocks, 128)
    tm, tk = _tiles_for(s_pad)
    adj_p = pad2(adj, s_pad, s_pad, jnp.bfloat16)
    x_p = pad2(x, s_pad, in_pad, jnp.bfloat16)

    fw1 = _feat_matmul(x_p, w1_p, tm=tm)                               # X @ W1
    fw2 = _gcn_layer1_fused_w2(adj_p, fw1, b1_p, w2_p, tm=tm, tk=tk)   # relu(A fw1+b1) @ W2
    emb_p, out_p = _gcn_layer2_head(adj_p, fw2, b2_p, wp_row, bp, tm=tm, tk=tk)

    return out_p[:stocks, :1], emb_p[:stocks, :hid]


# ---------------------------------------------------------------------------
# params / reference
# ---------------------------------------------------------------------------
def init_params(key, in_size, hid_size):
    k1, k2, k3 = jax.random.split(key, 3)
    scale1 = 1.0 / jnp.sqrt(in_size)
    scale2 = 1.0 / jnp.sqrt(hid_size)
    return {
        "w1": jax.random.normal(k1, (in_size, hid_size), jnp.float32) * scale1,
        "b1": jnp.zeros((1, hid_size), jnp.float32),
        "w2": jax.random.normal(k2, (hid_size, hid_size), jnp.float32) * scale2,
        "b2": jnp.zeros((1, hid_size), jnp.float32),
        "wp": jax.random.normal(k3, (hid_size, 1), jnp.float32) * scale2,
        "bp": jnp.zeros((1, 1), jnp.float32),
        # lamb parameter exists in the module but is unused in forward:
        "lamb": jnp.ones((1, 1), jnp.float32),
    }


def reference_forward(x, adj, p):
    h1 = jnp.maximum(adj @ (x @ p["w1"]) + p["b1"], 0.0)
    emb = adj @ (h1 @ p["w2"]) + p["b2"]
    out = emb @ p["wp"] + p["bp"]
    return out, emb


def _make_inputs(key, stocks, in_size):
    kx, ka = jax.random.split(key, 2)
    x = jax.random.normal(kx, (stocks, in_size), jnp.float32)
    a = (jax.random.uniform(ka, (stocks, stocks)) > 0.6).astype(jnp.float32)
    a = jnp.maximum(a, a.T) + jnp.eye(stocks, dtype=jnp.float32)
    adj = a / jnp.sum(a, axis=1, keepdims=True)
    return x, adj


if __name__ == "__main__":
    in_size, hid_size = 8, 32
    key = jax.random.PRNGKey(0)
    kin, kp = jax.random.split(key, 2)
    params = init_params(kp, in_size, hid_size)

    ok = True
    # (stocks=16 exercises the fully fused small path; stocks=640 the tiled path)
    for stocks in (16, 640):
        x, adj = _make_inputs(jax.random.fold_in(kin, stocks), stocks, in_size)
        out, emb = student_forward(x, adj, params)
        jax.block_until_ready((out, emb))
        out_ref, emb_ref = reference_forward(x, adj, params)
        ok &= out.shape == out_ref.shape and emb.shape == emb_ref.shape
        # bf16 MXU operands (f32 accumulation) -> looser tolerance than pure f32
        ok &= bool(jnp.allclose(out, out_ref, atol=5e-2, rtol=5e-2))
        ok &= bool(jnp.allclose(emb, emb_ref, atol=5e-2, rtol=5e-2))

    assert ok
    print("KERNEL_OK")
</pallas_src>

<mosaic_0001>
module attributes {stable_mosaic.version = 11 : i64} {
  func.func @_fused_small_kernel(%arg0: i32, %arg1: memref<16x128xbf16, #tpu.memory_space<vmem>>, %arg2: memref<16x16xbf16, #tpu.memory_space<vmem>>, %arg3: memref<128x128xbf16, #tpu.memory_space<vmem>>, %arg4: memref<1x128xf32, #tpu.memory_space<vmem>>, %arg5: memref<128x128xbf16, #tpu.memory_space<vmem>>, %arg6: memref<1x128xf32, #tpu.memory_space<vmem>>, %arg7: memref<1x128xf32, #tpu.memory_space<vmem>>, %arg8: memref<1x1xf32, #tpu.memory_space<smem>>, %arg9: memref<16x128xf32, #tpu.memory_space<vmem>>, %arg10: memref<16x128xf32, #tpu.memory_space<vmem>>) attributes {dimension_semantics = [#tpu.dimension_semantics<arbitrary>], iteration_bounds = array<i64: 1>, scalar_prefetch = 0 : i64, scratch_operands = 0 : i64, tpu.core_type = #tpu.core_type<tc>, window_params = [{pipeline_mode = #tpu.pipeline_mode<synchronous>, transform_indices = @transform_0, window_bounds = array<i64: 16, 128>}, {pipeline_mode = #tpu.pipeline_mode<synchronous>, transform_indices = @transform_1, window_bounds = array<i64: 16, 16>}, {pipeline_mode = #tpu.pipeline_mode<synchronous>, transform_indices = @transform_2, window_bounds = array<i64: 128, 128>}, {pipeline_mode = #tpu.pipeline_mode<synchronous>, transform_indices = @transform_3, window_bounds = array<i64: 1, 128>}, {pipeline_mode = #tpu.pipeline_mode<synchronous>, transform_indices = @transform_4, window_bounds = array<i64: 128, 128>}, {pipeline_mode = #tpu.pipeline_mode<synchronous>, transform_indices = @transform_5, window_bounds = array<i64: 1, 128>}, {pipeline_mode = #tpu.pipeline_mode<synchronous>, transform_indices = @transform_6, window_bounds = array<i64: 1, 128>}, {transform_indices = @transform_7, window_bounds = array<i64: 1, 1>}, {pipeline_mode = #tpu.pipeline_mode<synchronous>, transform_indices = @transform_8, window_bounds = array<i64: 16, 128>}, {pipeline_mode = #tpu.pipeline_mode<synchronous>, transform_indices = @transform_9, window_bounds = array<i64: 16, 128>}]} {
    %c0 = arith.constant 0 : index
    %c0_0 = arith.constant 0 : index
    %0 = vector.load %arg1[%c0, %c0_0] : memref<16x128xbf16, #tpu.memory_space<vmem>>, vector<16x128xbf16>
    %c0_1 = arith.constant 0 : index
    %c0_2 = arith.constant 0 : index
    %1 = vector.load %arg3[%c0_1, %c0_2] : memref<128x128xbf16, #tpu.memory_space<vmem>>, vector<128x128xbf16>
    %cst = arith.constant dense<0.000000e+00> : vector<16x128xf32>
    %2 = tpu.matmul %0, %1, %cst {dimension_numbers = #tpu.dot_dimension_numbers<[1], [0], [0], [1], [0, 0, 1, 1], [], []>} : vector<16x128xbf16>, vector<128x128xbf16>, vector<16x128xf32> -> vector<16x128xf32>
    %3 = arith.truncf %2 : vector<16x128xf32> to vector<16x128xbf16>
    %c0_3 = arith.constant 0 : index
    %c0_4 = arith.constant 0 : index
    %4 = vector.load %arg2[%c0_3, %c0_4] : memref<16x16xbf16, #tpu.memory_space<vmem>>, vector<16x16xbf16>
    %cst_5 = arith.constant dense<0.000000e+00> : vector<16x128xf32>
    %5 = tpu.matmul %4, %3, %cst_5 {dimension_numbers = #tpu.dot_dimension_numbers<[1], [0], [0], [1], [0, 0, 1, 1], [], []>} : vector<16x16xbf16>, vector<16x128xbf16>, vector<16x128xf32> -> vector<16x128xf32>
    %c0_6 = arith.constant 0 : index
    %c0_7 = arith.constant 0 : index
    %6 = vector.load %arg4[%c0_6, %c0_7] : memref<1x128xf32, #tpu.memory_space<vmem>>, vector<1x128xf32>
    %7 = vector.broadcast %6 : vector<1x128xf32> to vector<16x128xf32>
    %8 = arith.addf %5, %7 : vector<16x128xf32>
    %cst_8 = arith.constant 0.000000e+00 : f32
    %9 = vector.broadcast %cst_8 : f32 to vector<16x128xf32>
    %10 = arith.maximumf %8, %9 : vector<16x128xf32>
    %11 = arith.truncf %10 : vector<16x128xf32> to vector<16x128xbf16>
    %c0_9 = arith.constant 0 : index
    %c0_10 = arith.constant 0 : index
    %12 = vector.load %arg5[%c0_9, %c0_10] : memref<128x128xbf16, #tpu.memory_space<vmem>>, vector<128x128xbf16>
    %cst_11 = arith.constant dense<0.000000e+00> : vector<16x128xf32>
    %13 = tpu.matmul %11, %12, %cst_11 {dimension_numbers = #tpu.dot_dimension_numbers<[1], [0], [0], [1], [0, 0, 1, 1], [], []>} : vector<16x128xbf16>, vector<128x128xbf16>, vector<16x128xf32> -> vector<16x128xf32>
    %14 = arith.truncf %13 : vector<16x128xf32> to vector<16x128xbf16>
    %c0_12 = arith.constant 0 : index
    %c0_13 = arith.constant 0 : index
    %15 = vector.load %arg2[%c0_12, %c0_13] : memref<16x16xbf16, #tpu.memory_space<vmem>>, vector<16x16xbf16>
    %cst_14 = arith.constant dense<0.000000e+00> : vector<16x128xf32>
    %16 = tpu.matmul %15, %14, %cst_14 {dimension_numbers = #tpu.dot_dimension_numbers<[1], [0], [0], [1], [0, 0, 1, 1], [], []>} : vector<16x16xbf16>, vector<16x128xbf16>, vector<16x128xf32> -> vector<16x128xf32>
    %c0_15 = arith.constant 0 : index
    %c0_16 = arith.constant 0 : index
    %17 = vector.load %arg6[%c0_15, %c0_16] : memref<1x128xf32, #tpu.memory_space<vmem>>, vector<1x128xf32>
    %18 = vector.broadcast %17 : vector<1x128xf32> to vector<16x128xf32>
    %19 = arith.addf %16, %18 : vector<16x128xf32>
    %c0_17 = arith.constant 0 : index
    %c0_18 = arith.constant 0 : index
    %20 = vector.load %arg9[%c0_17, %c0_18] : memref<16x128xf32, #tpu.memory_space<vmem>>, vector<16x128xf32>
    tpu.vector_store %arg9[%c0_17, %c0_18], %19 {strides = array<i32>} : memref<16x128xf32, #tpu.memory_space<vmem>>, vector<16x128xf32>,
    %c0_19 = arith.constant 0 : index
    %c0_20 = arith.constant 0 : index
    %21 = vector.load %arg7[%c0_19, %c0_20] : memref<1x128xf32, #tpu.memory_space<vmem>>, vector<1x128xf32>
    %22 = vector.broadcast %21 : vector<1x128xf32> to vector<16x128xf32>
    %23 = arith.mulf %19, %22 : vector<16x128xf32>
    %cst_21 = arith.constant dense<0.000000e+00> : vector<16xf32>
    %24 = vector.multi_reduction <add>, %23, %cst_21 [1] : vector<16x128xf32> to vector<16xf32>
    %25 = vector.shape_cast %24 : vector<16xf32> to vector<16x1xf32>
    %c0_22 = arith.constant 0 : index
    %c0_23 = arith.constant 0 : index
    %26 = memref.load %arg8[%c0_22, %c0_23] : memref<1x1xf32, #tpu.memory_space<smem>>
    %27 = vector.broadcast %26 : f32 to vector<16x1xf32>
    %28 = arith.addf %25, %27 : vector<16x1xf32>
    %29 = vector.shape_cast %28 : vector<16x1xf32> to vector<16x1xf32>
    %30 = vector.broadcast %29 : vector<16x1xf32> to vector<16x128xf32>
    %c0_24 = arith.constant 0 : index
    %c0_25 = arith.constant 0 : index
    %31 = vector.load %arg10[%c0_24, %c0_25] : memref<16x128xf32, #tpu.memory_space<vmem>>, vector<16x128xf32>
    tpu.vector_store %arg10[%c0_24, %c0_25], %30 {strides = array<i32>} : memref<16x128xf32, #tpu.memory_space<vmem>>, vector<16x128xf32>,
    return
  }
  func.func @transform_0(%arg0: i32) -> (i32, i32) {
    %c0_i32 = arith.constant 0 : i32
    %c0_i32_0 = arith.constant 0 : i32
    %c0_i32_1 = arith.constant 0 : i32
    return %c0_i32, %c0_i32_0 : i32, i32
  }
  func.func @transform_1(%arg0: i32) -> (i32, i32) {
    %c0_i32 = arith.constant 0 : i32
    %c0_i32_0 = arith.constant 0 : i32
    %c0_i32_1 = arith.constant 0 : i32
    return %c0_i32, %c0_i32_0 : i32, i32
  }
  func.func @transform_2(%arg0: i32) -> (i32, i32) {
    %c0_i32 = arith.constant 0 : i32
    %c0_i32_0 = arith.constant 0 : i32
    %c0_i32_1 = arith.constant 0 : i32
    return %c0_i32, %c0_i32_0 : i32, i32
  }
  func.func @transform_3(%arg0: i32) -> (i32, i32) {
    %c0_i32 = arith.constant 0 : i32
    %c0_i32_0 = arith.constant 0 : i32
    %c0_i32_1 = arith.constant 0 : i32
    return %c0_i32, %c0_i32_0 : i32, i32
  }
  func.func @transform_4(%arg0: i32) -> (i32, i32) {
    %c0_i32 = arith.constant 0 : i32
    %c0_i32_0 = arith.constant 0 : i32
    %c0_i32_1 = arith.constant 0 : i32
    return %c0_i32, %c0_i32_0 : i32, i32
  }
  func.func @transform_5(%arg0: i32) -> (i32, i32) {
    %c0_i32 = arith.constant 0 : i32
    %c0_i32_0 = arith.constant 0 : i32
    %c0_i32_1 = arith.constant 0 : i32
    return %c0_i32, %c0_i32_0 : i32, i32
  }
  func.func @transform_6(%arg0: i32) -> (i32, i32) {
    %c0_i32 = arith.constant 0 : i32
    %c0_i32_0 = arith.constant 0 : i32
    %c0_i32_1 = arith.constant 0 : i32
    return %c0_i32, %c0_i32_0 : i32, i32
  }
  func.func @transform_7(%arg0: i32) -> (i32, i32) {
    %c0_i32 = arith.constant 0 : i32
    %c0_i32_0 = arith.constant 0 : i32
    %c0_i32_1 = arith.constant 0 : i32
    return %c0_i32, %c0_i32_0 : i32, i32
  }
  func.func @transform_8(%arg0: i32) -> (i32, i32) {
    %c0_i32 = arith.constant 0 : i32
    %c0_i32_0 = arith.constant 0 : i32
    %c0_i32_1 = arith.constant 0 : i32
    return %c0_i32, %c0_i32_0 : i32, i32
  }
  func.func @transform_9(%arg0: i32) -> (i32, i32) {
    %c0_i32 = arith.constant 0 : i32
    %c0_i32_0 = arith.constant 0 : i32
    %c0_i32_1 = arith.constant 0 : i32
    return %c0_i32, %c0_i32_0 : i32, i32
  }
}

</mosaic_0001>

<bundles_post_ra>
// kernel: student_forward.1
= control target key start
LH: loop header
LB: loop body
LE: loop exit
PB: predicated region body
PF: predicated region fallthrough
CT: control target
= control target key end

     0   :  { %v549_v1 = vmov 0.0   ;;  %vm550_vm0 = vmmov 0   ;;  %s716_s0 = inlined_call_operand.vmem [shape: bf16[16,128], index: 0, kind: input, shape index: {}]   ;;  %s717_s1 = inlined_call_operand.vmem [shape: bf16[16,16], index: 1, kind: input, shape index: {}]   ;;  %s718_s2 = inlined_call_operand.vmem [shape: bf16[128,128], index: 2, kind: input, shape index: {}]   ;;  %s719_s3 = inlined_call_operand.vmem [shape: f32[1,128], index: 3, kind: input, shape index: {}]   ;;  %s720_s4 = inlined_call_operand.vmem [shape: bf16[128,128], index: 4, kind: input, shape index: {}]   ;;  %s721_s5 = inlined_call_operand.vmem [shape: f32[1,128], index: 5, kind: input, shape index: {}]   ;;  %s722_s6 = inlined_call_operand.vmem [shape: f32[1,128], index: 6, kind: input, shape index: {}]   ;;  %s723_s7 = inlined_call_operand.<no memory space> [shape: f32[1,1], index: 7, kind: input, shape index: {}]   ;;  %s724_s8 = inlined_call_operand.hbm [shape: f32[16,128], index: 8, kind: output, shape index: {0}]   ;;  %s725_s9 = inlined_call_operand.vmem [shape: f32[16,128], index: 9, kind: output, shape index: {1}]  }
   0x1   :  { %v507_v0 = vld [vmem:[%s718_s2] sm:$0xff]   ;;  %450 = vmatprep.subr.bf16.mxu0 %v549_v1  ;;  %470 = vmatprep.subr.bf16.mxu1 %v549_v1  ;;  %v508_v2 = vld [vmem:[%s718_s2 + $0x8] sm:$0xff]   ;;  %v509_v3 = vld [vmem:[%s718_s2 + $0x10] sm:$0xff]  }
   0x2   :  { %451 = vmatpush3.bf16.msra.mxu0 %v507_v0  ;;  %466 = vmatprep.mubr.msk.bf16.mxu0 %vm550_vm0, %v549_v1  ;;  %v510_v4 = vld [vmem:[%s718_s2 + $0x18] sm:$0xff]   ;;  %v511_v5 = vld [vmem:[%s718_s2 + $0x20] sm:$0xff]  }
   0x3   :  { %452 = vmatprep.subr.bf16.mxu0 %v549_v1  ;;  %472 = vmatprep.mubr.msk.bf16.mxu1 %vm550_vm0, %v549_v1 }
   0x6   :  { %453 = vmatpush3.bf16.msra.mxu0 %v508_v2 }
   0x7   :  { %454 = vmatprep.subr.bf16.mxu0 %v549_v1 }
   0xa   :  { %455 = vmatpush3.bf16.msra.mxu0 %v509_v3 }
   0xb   :  { %456 = vmatprep.subr.bf16.mxu0 %v549_v1 }
   0xe   :  { %457 = vmatpush3.bf16.msra.mxu0 %v510_v4 }
   0xf   :  { %458 = vmatprep.subr.bf16.mxu0 %v549_v1 }
  0x10   :  { %16 = vsyncpa [#allocation4], 0  ;;  %v512_v6 = vld [vmem:[%s718_s2 + $0x28] sm:$0xff]   ;;  %v513_v7 = vld [vmem:[%s718_s2 + $0x30] sm:$0xff]   ;;  %vm162_vm1 = vcmask 130048   ;;  %s551_s25 = smov [#allocation3]  }
  0x11   :  { %v514_v8 = vld [vmem:[%s718_s2 + $0x38] sm:$0xff]   ;;  %v515_v9 = vld [vmem:[%s716_s0] sm:$0xff]   ;;  %v518_v17 = vld [vmem:[%s720_s4 + $0x8] sm:$0xff]   ;;  %s390_s26 = sshll.u32 %s551_s25, 4  ;;  %s391_s26 = int_to_ptr.vmem [resolvable:$true] %s390_s26 }
  0x12   :  { %459 = vmatpush3.bf16.msra.mxu0 %v511_v5  ;;  %v516_v15 = vld [vmem:[%s717_s1] sm:$0xff]   ;;  %v519_v18 = vld [vmem:[%s720_s4 + $0x10] sm:$0xff]   ;;  %v520_v19 = vld [vmem:[%s720_s4 + $0x18] sm:$0xff]   ;;  %p530_p1 = scmp.lt.s32.totalorder %s391_s26, %s391_s26 }
  0x13   :  { %460 = vmatprep.subr.bf16.mxu0 %v549_v1  ;;  %v517_v16 = vld [vmem:[%s720_s4] sm:$0xff]   ;;  %v522_v21 = vld [vmem:[%s720_s4 + $0x28] sm:$0xff]   ;;  %v523_v22 = vld [vmem:[%s720_s4 + $0x30] sm:$0xff]  }
  0x14   :  { %v521_v20 = vld [vmem:[%s720_s4 + $0x20] sm:$0xff]   ;;  %v524_v23 = vld [vmem:[%s720_s4 + $0x38] sm:$0xff]  }
  0x15   :  { %v414_v24 = vld [vmem:[%s719_s3] ss:$0 sm:$0xff] }
  0x16   :  { %461 = vmatpush3.bf16.msra.mxu0 %v512_v6  ;;  %v425_v39 = vld [vmem:[%s721_s5] ss:$0 sm:$0xff]  ;;  %s525_s5 = scalar_lea.vmem %s391_s26, 256 }
  0x17   :  { %462 = vmatprep.subr.bf16.mxu0 %v549_v1  ;;  %v427_v41 = vld [vmem:[%s722_s6] ss:$0 sm:$0xff]  ;;  %p526_p0 = scmp.ne.s32.totalorder %s391_s26, %s525_s5  ;;  %p531_p2 = scmp.lt.s32.totalorder %s525_s5, %s525_s5 }
  0x19   :  { %p532_p3 = por %p531_p2, %p530_p1 }
  0x1a   :  { %463 = vmatpush3.bf16.msra.mxu0 %v513_v7 }
  0x1b   :  { %464 = vmatprep.subr.bf16.mxu0 %v549_v1  ;;  %p533_p4 = pnand %p532_p3, %p526_p0 }
  0x1e   :  { %465 = vmatpush3.bf16.msra.mxu0 %v514_v8 }
  0x1f   :  { %496 = vmatprep.subr.bf16.mxu0 %v549_v1 }
  0x21   :  { %467 = vmatmul.mubr.bf16.vlgmr.msra.gmra.mrb[0].mxu0 %v515_v9 }
  0x22   :  { %498 = vmatprep.mubr.msk.bf16.mxu0 %vm550_vm0, %v549_v1 }
  0xf4   :  { %v140_v10 = vpop.f32.mrb[0].mxu0 }
  0xf5   :  { %v468_v11 = vpop.f32.mrb[1].mxu0 }
  0xf6   :  { %v143_v12 = vpop.f32.mrb[2].mxu0 }
  0xf7   :  { %v147_v13 = vpack.c.bf16 %v143_v12, %v140_v10  ;;  %v469_v14 = vpop.f32.mrb[3].mxu0 }
  0xf9   :  { %471 = vmatpush3.bf16.msra.mxu1 %v147_v13 }
  0xfa   :  { %476 = vmatprep.subr.bf16.mxu1 %v549_v1 }
  0xfc   :  { %473 = vmatmul.mubr.msk.bf16.vlgmr.msra.gmra.mrb[0].mxu1 %vm162_vm1, %v516_v15 }
  0xfd   :  { %477 = vmatpush3.bf16.msra.mxu1 %v517_v16  ;;  %492 = vmatprep.mubr.msk.bf16.mxu1 %vm550_vm0, %v549_v1 }
  0xfe   :  { %478 = vmatprep.subr.bf16.mxu1 %v549_v1 }
 0x101   :  { %479 = vmatpush3.bf16.msra.mxu1 %v518_v17 }
 0x102   :  { %480 = vmatprep.subr.bf16.mxu1 %v549_v1 }
 0x105   :  { %481 = vmatpush3.bf16.msra.mxu1 %v519_v18 }
 0x106   :  { %482 = vmatprep.subr.bf16.mxu1 %v549_v1 }
 0x109   :  { %483 = vmatpush3.bf16.msra.mxu1 %v520_v19 }
 0x10a   :  { %484 = vmatprep.subr.bf16.mxu1 %v549_v1 }
 0x10d   :  { %485 = vmatpush3.bf16.msra.mxu1 %v521_v20 }
 0x10e   :  { %486 = vmatprep.subr.bf16.mxu1 %v549_v1 }
 0x111   :  { %487 = vmatpush3.bf16.msra.mxu1 %v522_v21 }
 0x112   :  { %488 = vmatprep.subr.bf16.mxu1 %v549_v1 }
 0x115   :  { %489 = vmatpush3.bf16.msra.mxu1 %v523_v22 }
 0x116   :  { %490 = vmatprep.subr.bf16.mxu1 %v549_v1 }
 0x119   :  { %491 = vmatpush3.bf16.msra.mxu1 %v524_v23 }
 0x1cf   :  { %v200_v25 = vpop.f32.mrb[0].mxu1 }
 0x1d0   :  { %v201_v26 = vadd.f32 %v414_v24, %v200_v25  ;;  %v474_v27 = vpop.f32.mrb[1].mxu1 }
 0x1d1   :  { %v203_v28 = vpop.f32.mrb[2].mxu1 }
 0x1d2   :  { %v204_v29 = vadd.f32 %v414_v24, %v203_v28  ;;  %v475_v30 = vpop.f32.mrb[3].mxu1  ;;  %v207_v31 = vmax.f32 %v201_v26, 0.0 }
 0x1d4   :  { %v208_v32 = vmax.f32 %v204_v29, 0.0 }
 0x1d6   :  { %v209_v33 = vpack.c.bf16 %v208_v32, %v207_v31 }
 0x1d8   :  { %493 = vmatmul.mubr.bf16.vlgmr.msra.gmra.mrb[4].mxu1 %v209_v33 }
 0x2ab   :  { %v308_v34 = vpop.f32.mrb[4].mxu1 }
 0x2ac   :  { %v494_v35 = vpop.f32.mrb[5].mxu1 }
 0x2ad   :  { %v311_v36 = vpop.f32.mrb[6].mxu1 }
 0x2ae   :  { %v315_v37 = vpack.c.bf16 %v311_v36, %v308_v34  ;;  %v495_v38 = vpop.f32.mrb[7].mxu1 }
 0x2b0   :  { %497 = vmatpush3.bf16.msra.mxu0 %v315_v37 }
 0x2b3   :  { %499 = vmatmul.mubr.msk.bf16.vlgmr.msra.gmra.mrb[4].mxu0 %vm162_vm1, %v516_v15 }
 0x386   :  { %v357_v40 = vpop.f32.mrb[4].mxu0 }
 0x387   :  { %v358_v42 = vadd.f32 %v425_v39, %v357_v40  ;;  %v500_v43 = vpop.f32.mrb[5].mxu0 }
 0x388   :  { %v360_v44 = vpop.f32.mrb[6].mxu0 }
 0x389   :  { %364 = vst [vmem:[#allocation3] sm:$0xff] %v358_v42  ;;  %v361_v45 = vadd.f32 %v425_v39, %v360_v44  ;;  %v501_v46 = vpop.f32.mrb[7].mxu0  ;;  %v373_v47 = vmul.f32 %v427_v41, %v358_v42 }
 0x38b   :  { %365 = vst [vmem:[#allocation3 + $0x8] sm:$0xff] %v361_v45  ;;  %375 = vadd.xlane.f32.xlu0 %v373_v47  ;;  %v374_v48 = vmul.f32 %v427_v41, %v361_v45 }
 0x38f   :  { %377 = vadd.xlane.f32.xlu0 %v374_v48 }
 0x390   :  { %536 = shalt.err (!%p533_p4)
}
 0x391   :  { %s537_s2 = scalar_lea.hbm %s724_s8, 256 }
 0x392   :  { %p538_p5 = scmp.ne.s32.totalorder %s724_s8, %s537_s2  ;;  %p541_p6 = scmp.lt.u32.totalorder %s537_s2, %s724_s8 }
 0x394   :  { %p543_p7 = pnand %p541_p6, %p538_p5 }
 0x396   :  { %546 = shalt.err (!%p543_p7)
}
 0x397   :  { %s552_s1 = smov 128   ;;  %s553_s10 = smov 8   ;;  %v380_v49 = vstv %s723_s7 }
 0x398   :  { %396 = dma.vmem_to_hbm [thread:$0]  %s391_s26, 256, %s724_s8, [#allocation4], %s552_s1, %s552_s1, %s553_s10  }
 0x418   :  { %v376_v50 = vpop.xlane.xlu0 %375 }
 0x419   :  { %v381_v51 = vadd.f32 %v380_v49, %v376_v50 }
 0x41b   :  { %383 = vst [vmem:[%s725_s9] sm:$0xff] %v381_v51 }
 0x41c   :  { %v378_v52 = vpop.xlane.xlu0 %377 }
 0x41d   :  { %v382_v53 = vadd.f32 %v380_v49, %v378_v52 }
 0x41f   :  { %384 = vst [vmem:[%s725_s9 + $0x8] sm:$0xff] %v382_v53 }
 0x420   :  { %547 = dma.done.wait [#allocation4], 256  }
 0x421   :  { %548 = vsyncadd [#allocation4], 4294967040 }
 0x422   :  { %404 = vsyncpa [#allocation4], 1 }

</bundles_post_ra>
